<compile_context>
chip_gen: v7x
topology: tpu7x:2x2x1
jax: 0.10.0
libtpu: 0.0.40
codegen_flags: <defaults>
</compile_context>

<pallas_src>
import jax
import jax.numpy as jnp
from jax.experimental import pallas as pl
from jax.experimental.pallas import tpu as pltpu

REPEATS = 2 ** 8            # eight doublings via torch.cat along dim 0
M, K, N = 8, 16, 8          # small mm-compatible shapes


def _mm_tile_kernel(x1_ref, x2_ref, o_ref):
    # The single hot-path matmul on the MXU.
    r = jnp.dot(x1_ref[...], x2_ref[...],
                preferred_element_type=jnp.float32)          # (M, N) = (8, 8)
    # Replicate along a new leading dim: 256 identical (8, 8) blocks.
    o_ref[...] = jnp.broadcast_to(r[None], (REPEATS, M, N)).astype(o_ref.dtype)


@jax.jit
def model_forward(x1, x2):
    m, k = x1.shape
    k2, n = x2.shape
    assert k == k2, "inner dims must match for mm"
    assert (m, k, n) == (M, K, N)

    bytes_accessed = (M * K + K * N + REPEATS * M * N) * 4
    out3 = pl.pallas_call(
        _mm_tile_kernel,
        out_shape=jax.ShapeDtypeStruct((REPEATS, M, N), x1.dtype),
        in_specs=[
            pl.BlockSpec(memory_space=pltpu.MemorySpace.VMEM),
            pl.BlockSpec(memory_space=pltpu.MemorySpace.VMEM),
        ],
        out_specs=pl.BlockSpec(memory_space=pltpu.MemorySpace.VMEM),
        cost_estimate=pl.CostEstimate(
            flops=2 * M * K * N,
            transcendentals=0,
            bytes_accessed=bytes_accessed,
        ),
    )(x1, x2)

    # (256, 8, 8) -> (2048, 8) is tile-layout-compatible (minor dim unchanged),
    # so this reshape does not emit a relayout copy kernel.
    return out3.reshape(REPEATS * M, N)


if __name__ == "__main__":
    key = jax.random.PRNGKey(0)
    k1, k2 = jax.random.split(key)

    x1 = jax.random.normal(k1, (M, K), dtype=jnp.float32)
    x2 = jax.random.normal(k2, (K, N), dtype=jnp.float32)

    out = model_forward(x1, x2)
    out = jax.block_until_ready(out)

    # Reference: mm then eight doublings == tile 256x along axis 0.
    ref = jnp.tile(x1 @ x2, (REPEATS, 1))
    assert out.shape == (REPEATS * M, N)
    assert jnp.allclose(out, ref, atol=1e-5, rtol=1e-5)

    print("KERNEL_OK")
</pallas_src>

<mosaic_0001>
module attributes {stable_mosaic.version = 11 : i64} {
  func.func @_mm_tile_kernel(%arg0: memref<8x16xf32, #tpu.memory_space<vmem>>, %arg1: memref<16x8xf32, #tpu.memory_space<vmem>>, %arg2: memref<256x8x8xf32, #tpu.memory_space<vmem>>) attributes {dimension_semantics = [], scalar_prefetch = 0 : i64, scratch_operands = 0 : i64, tpu.core_type = #tpu.core_type<tc>} {
    %c0 = arith.constant 0 : index
    %c0_0 = arith.constant 0 : index
    %0 = vector.load %arg0[%c0, %c0_0] : memref<8x16xf32, #tpu.memory_space<vmem>>, vector<8x16xf32>
    %c0_1 = arith.constant 0 : index
    %c0_2 = arith.constant 0 : index
    %1 = vector.load %arg1[%c0_1, %c0_2] : memref<16x8xf32, #tpu.memory_space<vmem>>, vector<16x8xf32>
    %cst = arith.constant dense<0.000000e+00> : vector<8x8xf32>
    %2 = tpu.matmul %0, %1, %cst {dimension_numbers = #tpu.dot_dimension_numbers<[1], [0], [0], [1], [0, 0, 1, 1], [], []>} : vector<8x16xf32>, vector<16x8xf32>, vector<8x8xf32> -> vector<8x8xf32>
    %3 = vector.shape_cast %2 : vector<8x8xf32> to vector<1x8x8xf32>
    %4 = vector.shape_cast %3 : vector<1x8x8xf32> to vector<1x8x8xf32>
    %5 = vector.broadcast %4 : vector<1x8x8xf32> to vector<256x8x8xf32>
    %c0_3 = arith.constant 0 : index
    %c0_4 = arith.constant 0 : index
    %c0_5 = arith.constant 0 : index
    %6 = vector.load %arg2[%c0_3, %c0_4, %c0_5] : memref<256x8x8xf32, #tpu.memory_space<vmem>>, vector<256x8x8xf32>
    tpu.vector_store %arg2[%c0_3, %c0_4, %c0_5], %5 {strides = array<i32>} : memref<256x8x8xf32, #tpu.memory_space<vmem>>, vector<256x8x8xf32>,
    return
  }
}

</mosaic_0001>

<bundles_post_ra>
// kernel: model_forward.1
= control target key start
LH: loop header
LB: loop body
LE: loop exit
PB: predicated region body
PF: predicated region fallthrough
CT: control target
= control target key end

     0   :  { %v366_v0 = vmov 0.0|0.0   ;;  %vm367_vm0 = vmmov 0   ;;  %v368_v3 = vmov 0.0   ;;  %vm14_vm1 = vcmask 130048   ;;  %s1675_s1 = inlined_call_operand.vmem [shape: f32[16,8], index: 1, kind: input, shape index: {}]   ;;  %s1676_s0 = inlined_call_operand.vmem [shape: f32[8,16], index: 0, kind: input, shape index: {}]   ;;  %s1677_s2 = inlined_call_operand.vmem [shape: f32[256,8,8], index: 2, kind: output, shape index: {}]  }
   0x1   :  { %360 = vmatprep.subr.bf16.mxu0 %v366_v0  ;;  %v12_v1 = vld [vmem:[%s1675_s1] sm:$0xff]  ;;  %v13_v2 = vld [vmem:[%s1675_s1 + $0x8] sm:$0xff]  ;;  %357 = vmatprep.mubr.msk.f32.mxu0 %vm367_vm0, %v368_v3  ;;  %vm88_vm2 = vcmask 64512  }
   0x2   :  { %v361_v4 = vpack.c.bf16 %v13_v2, %v12_v1  ;;  %v11_v5 = vld [vmem:[%s1676_s0] sm:$0xff] }
   0x4   :  { %362 = vmatpush3.bf16.msra.mxu0 %v361_v4 }
   0x7   :  { %358 = vmatmul.mubr.msk.f32.vlgmr.msra.gmra.mrb[0].mxu0 %vm14_vm1, %v11_v5 }
  0xda   :  { %v393_v6 = vpop.f32.mrb[0].mxu0 }
  0xdb   :  { %89 = vst.msk [vmem:[%s1677_s2] sm:$0xff] %vm88_vm2, %v393_v6  ;;  %90 = vst.msk [vmem:[%s1677_s2 + $0x8] sm:$0xff] %vm88_vm2, %v393_v6  ;;  %v359_v7 = vpop.f32.mrb[1].mxu0 }
  0xdc   :  { %91 = vst.msk [vmem:[%s1677_s2 + $0x10] sm:$0xff] %vm88_vm2, %v393_v6  ;;  %92 = vst.msk [vmem:[%s1677_s2 + $0x18] sm:$0xff] %vm88_vm2, %v393_v6 }
  0xdd   :  { %93 = vst.msk [vmem:[%s1677_s2 + $0x20] sm:$0xff] %vm88_vm2, %v393_v6  ;;  %94 = vst.msk [vmem:[%s1677_s2 + $0x28] sm:$0xff] %vm88_vm2, %v393_v6 }
  0xde   :  { %95 = vst.msk [vmem:[%s1677_s2 + $0x30] sm:$0xff] %vm88_vm2, %v393_v6  ;;  %96 = vst.msk [vmem:[%s1677_s2 + $0x38] sm:$0xff] %vm88_vm2, %v393_v6 }
  0xdf   :  { %97 = vst.msk [vmem:[%s1677_s2 + $0x40] sm:$0xff] %vm88_vm2, %v393_v6  ;;  %98 = vst.msk [vmem:[%s1677_s2 + $0x48] sm:$0xff] %vm88_vm2, %v393_v6 }
  0xe0   :  { %99 = vst.msk [vmem:[%s1677_s2 + $0x50] sm:$0xff] %vm88_vm2, %v393_v6  ;;  %100 = vst.msk [vmem:[%s1677_s2 + $0x58] sm:$0xff] %vm88_vm2, %v393_v6 }
  0xe1   :  { %101 = vst.msk [vmem:[%s1677_s2 + $0x60] sm:$0xff] %vm88_vm2, %v393_v6  ;;  %102 = vst.msk [vmem:[%s1677_s2 + $0x68] sm:$0xff] %vm88_vm2, %v393_v6 }
  0xe2   :  { %103 = vst.msk [vmem:[%s1677_s2 + $0x70] sm:$0xff] %vm88_vm2, %v393_v6  ;;  %104 = vst.msk [vmem:[%s1677_s2 + $0x78] sm:$0xff] %vm88_vm2, %v393_v6 }
  0xe3   :  { %105 = vst.msk [vmem:[%s1677_s2 + $0x80] sm:$0xff] %vm88_vm2, %v393_v6  ;;  %106 = vst.msk [vmem:[%s1677_s2 + $0x88] sm:$0xff] %vm88_vm2, %v393_v6 }
  0xe4   :  { %107 = vst.msk [vmem:[%s1677_s2 + $0x90] sm:$0xff] %vm88_vm2, %v393_v6  ;;  %108 = vst.msk [vmem:[%s1677_s2 + $0x98] sm:$0xff] %vm88_vm2, %v393_v6 }
  0xe5   :  { %109 = vst.msk [vmem:[%s1677_s2 + $0xa0] sm:$0xff] %vm88_vm2, %v393_v6  ;;  %110 = vst.msk [vmem:[%s1677_s2 + $0xa8] sm:$0xff] %vm88_vm2, %v393_v6 }
  0xe6   :  { %111 = vst.msk [vmem:[%s1677_s2 + $0xb0] sm:$0xff] %vm88_vm2, %v393_v6  ;;  %112 = vst.msk [vmem:[%s1677_s2 + $0xb8] sm:$0xff] %vm88_vm2, %v393_v6 }
  0xe7   :  { %113 = vst.msk [vmem:[%s1677_s2 + $0xc0] sm:$0xff] %vm88_vm2, %v393_v6  ;;  %114 = vst.msk [vmem:[%s1677_s2 + $0xc8] sm:$0xff] %vm88_vm2, %v393_v6 }
  0xe8   :  { %115 = vst.msk [vmem:[%s1677_s2 + $0xd0] sm:$0xff] %vm88_vm2, %v393_v6  ;;  %116 = vst.msk [vmem:[%s1677_s2 + $0xd8] sm:$0xff] %vm88_vm2, %v393_v6 }
  0xe9   :  { %117 = vst.msk [vmem:[%s1677_s2 + $0xe0] sm:$0xff] %vm88_vm2, %v393_v6  ;;  %118 = vst.msk [vmem:[%s1677_s2 + $0xe8] sm:$0xff] %vm88_vm2, %v393_v6 }
  0xea   :  { %119 = vst.msk [vmem:[%s1677_s2 + $0xf0] sm:$0xff] %vm88_vm2, %v393_v6  ;;  %120 = vst.msk [vmem:[%s1677_s2 + $0xf8] sm:$0xff] %vm88_vm2, %v393_v6 }
  0xeb   :  { %121 = vst.msk [vmem:[%s1677_s2 + $0x100] sm:$0xff] %vm88_vm2, %v393_v6  ;;  %122 = vst.msk [vmem:[%s1677_s2 + $0x108] sm:$0xff] %vm88_vm2, %v393_v6 }
  0xec   :  { %123 = vst.msk [vmem:[%s1677_s2 + $0x110] sm:$0xff] %vm88_vm2, %v393_v6  ;;  %124 = vst.msk [vmem:[%s1677_s2 + $0x118] sm:$0xff] %vm88_vm2, %v393_v6 }
  0xed   :  { %125 = vst.msk [vmem:[%s1677_s2 + $0x120] sm:$0xff] %vm88_vm2, %v393_v6  ;;  %126 = vst.msk [vmem:[%s1677_s2 + $0x128] sm:$0xff] %vm88_vm2, %v393_v6 }
  0xee   :  { %127 = vst.msk [vmem:[%s1677_s2 + $0x130] sm:$0xff] %vm88_vm2, %v393_v6  ;;  %128 = vst.msk [vmem:[%s1677_s2 + $0x138] sm:$0xff] %vm88_vm2, %v393_v6 }
  0xef   :  { %129 = vst.msk [vmem:[%s1677_s2 + $0x140] sm:$0xff] %vm88_vm2, %v393_v6  ;;  %130 = vst.msk [vmem:[%s1677_s2 + $0x148] sm:$0xff] %vm88_vm2, %v393_v6 }
  0xf0   :  { %131 = vst.msk [vmem:[%s1677_s2 + $0x150] sm:$0xff] %vm88_vm2, %v393_v6  ;;  %132 = vst.msk [vmem:[%s1677_s2 + $0x158] sm:$0xff] %vm88_vm2, %v393_v6 }
  0xf1   :  { %133 = vst.msk [vmem:[%s1677_s2 + $0x160] sm:$0xff] %vm88_vm2, %v393_v6  ;;  %134 = vst.msk [vmem:[%s1677_s2 + $0x168] sm:$0xff] %vm88_vm2, %v393_v6 }
  0xf2   :  { %135 = vst.msk [vmem:[%s1677_s2 + $0x170] sm:$0xff] %vm88_vm2, %v393_v6  ;;  %136 = vst.msk [vmem:[%s1677_s2 + $0x178] sm:$0xff] %vm88_vm2, %v393_v6 }
  0xf3   :  { %137 = vst.msk [vmem:[%s1677_s2 + $0x180] sm:$0xff] %vm88_vm2, %v393_v6  ;;  %138 = vst.msk [vmem:[%s1677_s2 + $0x188] sm:$0xff] %vm88_vm2, %v393_v6 }
  0xf4   :  { %139 = vst.msk [vmem:[%s1677_s2 + $0x190] sm:$0xff] %vm88_vm2, %v393_v6  ;;  %140 = vst.msk [vmem:[%s1677_s2 + $0x198] sm:$0xff] %vm88_vm2, %v393_v6 }
  0xf5   :  { %141 = vst.msk [vmem:[%s1677_s2 + $0x1a0] sm:$0xff] %vm88_vm2, %v393_v6  ;;  %142 = vst.msk [vmem:[%s1677_s2 + $0x1a8] sm:$0xff] %vm88_vm2, %v393_v6 }
  0xf6   :  { %143 = vst.msk [vmem:[%s1677_s2 + $0x1b0] sm:$0xff] %vm88_vm2, %v393_v6  ;;  %144 = vst.msk [vmem:[%s1677_s2 + $0x1b8] sm:$0xff] %vm88_vm2, %v393_v6 }
  0xf7   :  { %145 = vst.msk [vmem:[%s1677_s2 + $0x1c0] sm:$0xff] %vm88_vm2, %v393_v6  ;;  %146 = vst.msk [vmem:[%s1677_s2 + $0x1c8] sm:$0xff] %vm88_vm2, %v393_v6 }
  0xf8   :  { %147 = vst.msk [vmem:[%s1677_s2 + $0x1d0] sm:$0xff] %vm88_vm2, %v393_v6  ;;  %148 = vst.msk [vmem:[%s1677_s2 + $0x1d8] sm:$0xff] %vm88_vm2, %v393_v6 }
  0xf9   :  { %149 = vst.msk [vmem:[%s1677_s2 + $0x1e0] sm:$0xff] %vm88_vm2, %v393_v6  ;;  %150 = vst.msk [vmem:[%s1677_s2 + $0x1e8] sm:$0xff] %vm88_vm2, %v393_v6 }
  0xfa   :  { %151 = vst.msk [vmem:[%s1677_s2 + $0x1f0] sm:$0xff] %vm88_vm2, %v393_v6  ;;  %152 = vst.msk [vmem:[%s1677_s2 + $0x1f8] sm:$0xff] %vm88_vm2, %v393_v6 }
  0xfb   :  { %153 = vst.msk [vmem:[%s1677_s2 + $0x200] sm:$0xff] %vm88_vm2, %v393_v6  ;;  %154 = vst.msk [vmem:[%s1677_s2 + $0x208] sm:$0xff] %vm88_vm2, %v393_v6 }
  0xfc   :  { %155 = vst.msk [vmem:[%s1677_s2 + $0x210] sm:$0xff] %vm88_vm2, %v393_v6  ;;  %156 = vst.msk [vmem:[%s1677_s2 + $0x218] sm:$0xff] %vm88_vm2, %v393_v6 }
  0xfd   :  { %157 = vst.msk [vmem:[%s1677_s2 + $0x220] sm:$0xff] %vm88_vm2, %v393_v6  ;;  %158 = vst.msk [vmem:[%s1677_s2 + $0x228] sm:$0xff] %vm88_vm2, %v393_v6 }
  0xfe   :  { %159 = vst.msk [vmem:[%s1677_s2 + $0x230] sm:$0xff] %vm88_vm2, %v393_v6  ;;  %160 = vst.msk [vmem:[%s1677_s2 + $0x238] sm:$0xff] %vm88_vm2, %v393_v6 }
  0xff   :  { %161 = vst.msk [vmem:[%s1677_s2 + $0x240] sm:$0xff] %vm88_vm2, %v393_v6  ;;  %162 = vst.msk [vmem:[%s1677_s2 + $0x248] sm:$0xff] %vm88_vm2, %v393_v6 }
 0x100   :  { %163 = vst.msk [vmem:[%s1677_s2 + $0x250] sm:$0xff] %vm88_vm2, %v393_v6  ;;  %164 = vst.msk [vmem:[%s1677_s2 + $0x258] sm:$0xff] %vm88_vm2, %v393_v6 }
 0x101   :  { %165 = vst.msk [vmem:[%s1677_s2 + $0x260] sm:$0xff] %vm88_vm2, %v393_v6  ;;  %166 = vst.msk [vmem:[%s1677_s2 + $0x268] sm:$0xff] %vm88_vm2, %v393_v6 }
 0x102   :  { %167 = vst.msk [vmem:[%s1677_s2 + $0x270] sm:$0xff] %vm88_vm2, %v393_v6  ;;  %168 = vst.msk [vmem:[%s1677_s2 + $0x278] sm:$0xff] %vm88_vm2, %v393_v6 }
 0x103   :  { %169 = vst.msk [vmem:[%s1677_s2 + $0x280] sm:$0xff] %vm88_vm2, %v393_v6  ;;  %170 = vst.msk [vmem:[%s1677_s2 + $0x288] sm:$0xff] %vm88_vm2, %v393_v6 }
 0x104   :  { %171 = vst.msk [vmem:[%s1677_s2 + $0x290] sm:$0xff] %vm88_vm2, %v393_v6  ;;  %172 = vst.msk [vmem:[%s1677_s2 + $0x298] sm:$0xff] %vm88_vm2, %v393_v6 }
 0x105   :  { %173 = vst.msk [vmem:[%s1677_s2 + $0x2a0] sm:$0xff] %vm88_vm2, %v393_v6  ;;  %174 = vst.msk [vmem:[%s1677_s2 + $0x2a8] sm:$0xff] %vm88_vm2, %v393_v6 }
 0x106   :  { %175 = vst.msk [vmem:[%s1677_s2 + $0x2b0] sm:$0xff] %vm88_vm2, %v393_v6  ;;  %176 = vst.msk [vmem:[%s1677_s2 + $0x2b8] sm:$0xff] %vm88_vm2, %v393_v6 }
 0x107   :  { %177 = vst.msk [vmem:[%s1677_s2 + $0x2c0] sm:$0xff] %vm88_vm2, %v393_v6  ;;  %178 = vst.msk [vmem:[%s1677_s2 + $0x2c8] sm:$0xff] %vm88_vm2, %v393_v6 }
 0x108   :  { %179 = vst.msk [vmem:[%s1677_s2 + $0x2d0] sm:$0xff] %vm88_vm2, %v393_v6  ;;  %180 = vst.msk [vmem:[%s1677_s2 + $0x2d8] sm:$0xff] %vm88_vm2, %v393_v6 }
 0x109   :  { %181 = vst.msk [vmem:[%s1677_s2 + $0x2e0] sm:$0xff] %vm88_vm2, %v393_v6  ;;  %182 = vst.msk [vmem:[%s1677_s2 + $0x2e8] sm:$0xff] %vm88_vm2, %v393_v6 }
 0x10a   :  { %183 = vst.msk [vmem:[%s1677_s2 + $0x2f0] sm:$0xff] %vm88_vm2, %v393_v6  ;;  %184 = vst.msk [vmem:[%s1677_s2 + $0x2f8] sm:$0xff] %vm88_vm2, %v393_v6 }
 0x10b   :  { %185 = vst.msk [vmem:[%s1677_s2 + $0x300] sm:$0xff] %vm88_vm2, %v393_v6  ;;  %186 = vst.msk [vmem:[%s1677_s2 + $0x308] sm:$0xff] %vm88_vm2, %v393_v6 }
 0x10c   :  { %187 = vst.msk [vmem:[%s1677_s2 + $0x310] sm:$0xff] %vm88_vm2, %v393_v6  ;;  %188 = vst.msk [vmem:[%s1677_s2 + $0x318] sm:$0xff] %vm88_vm2, %v393_v6 }
 0x10d   :  { %189 = vst.msk [vmem:[%s1677_s2 + $0x320] sm:$0xff] %vm88_vm2, %v393_v6  ;;  %190 = vst.msk [vmem:[%s1677_s2 + $0x328] sm:$0xff] %vm88_vm2, %v393_v6 }
 0x10e   :  { %191 = vst.msk [vmem:[%s1677_s2 + $0x330] sm:$0xff] %vm88_vm2, %v393_v6  ;;  %192 = vst.msk [vmem:[%s1677_s2 + $0x338] sm:$0xff] %vm88_vm2, %v393_v6 }
 0x10f   :  { %193 = vst.msk [vmem:[%s1677_s2 + $0x340] sm:$0xff] %vm88_vm2, %v393_v6  ;;  %194 = vst.msk [vmem:[%s1677_s2 + $0x348] sm:$0xff] %vm88_vm2, %v393_v6 }
 0x110   :  { %195 = vst.msk [vmem:[%s1677_s2 + $0x350] sm:$0xff] %vm88_vm2, %v393_v6  ;;  %196 = vst.msk [vmem:[%s1677_s2 + $0x358] sm:$0xff] %vm88_vm2, %v393_v6 }
 0x111   :  { %197 = vst.msk [vmem:[%s1677_s2 + $0x360] sm:$0xff] %vm88_vm2, %v393_v6  ;;  %198 = vst.msk [vmem:[%s1677_s2 + $0x368] sm:$0xff] %vm88_vm2, %v393_v6 }
 0x112   :  { %199 = vst.msk [vmem:[%s1677_s2 + $0x370] sm:$0xff] %vm88_vm2, %v393_v6  ;;  %200 = vst.msk [vmem:[%s1677_s2 + $0x378] sm:$0xff] %vm88_vm2, %v393_v6 }
 0x113   :  { %201 = vst.msk [vmem:[%s1677_s2 + $0x380] sm:$0xff] %vm88_vm2, %v393_v6  ;;  %202 = vst.msk [vmem:[%s1677_s2 + $0x388] sm:$0xff] %vm88_vm2, %v393_v6 }
 0x114   :  { %203 = vst.msk [vmem:[%s1677_s2 + $0x390] sm:$0xff] %vm88_vm2, %v393_v6  ;;  %204 = vst.msk [vmem:[%s1677_s2 + $0x398] sm:$0xff] %vm88_vm2, %v393_v6 }
 0x115   :  { %205 = vst.msk [vmem:[%s1677_s2 + $0x3a0] sm:$0xff] %vm88_vm2, %v393_v6  ;;  %206 = vst.msk [vmem:[%s1677_s2 + $0x3a8] sm:$0xff] %vm88_vm2, %v393_v6 }
 0x116   :  { %207 = vst.msk [vmem:[%s1677_s2 + $0x3b0] sm:$0xff] %vm88_vm2, %v393_v6  ;;  %208 = vst.msk [vmem:[%s1677_s2 + $0x3b8] sm:$0xff] %vm88_vm2, %v393_v6 }
 0x117   :  { %209 = vst.msk [vmem:[%s1677_s2 + $0x3c0] sm:$0xff] %vm88_vm2, %v393_v6  ;;  %210 = vst.msk [vmem:[%s1677_s2 + $0x3c8] sm:$0xff] %vm88_vm2, %v393_v6 }
 0x118   :  { %211 = vst.msk [vmem:[%s1677_s2 + $0x3d0] sm:$0xff] %vm88_vm2, %v393_v6  ;;  %212 = vst.msk [vmem:[%s1677_s2 + $0x3d8] sm:$0xff] %vm88_vm2, %v393_v6 }
 0x119   :  { %213 = vst.msk [vmem:[%s1677_s2 + $0x3e0] sm:$0xff] %vm88_vm2, %v393_v6  ;;  %214 = vst.msk [vmem:[%s1677_s2 + $0x3e8] sm:$0xff] %vm88_vm2, %v393_v6 }
 0x11a   :  { %215 = vst.msk [vmem:[%s1677_s2 + $0x3f0] sm:$0xff] %vm88_vm2, %v393_v6  ;;  %216 = vst.msk [vmem:[%s1677_s2 + $0x3f8] sm:$0xff] %vm88_vm2, %v393_v6 }
 0x11b   :  { %217 = vst.msk [vmem:[%s1677_s2 + $0x400] sm:$0xff] %vm88_vm2, %v393_v6  ;;  %218 = vst.msk [vmem:[%s1677_s2 + $0x408] sm:$0xff] %vm88_vm2, %v393_v6 }
 0x11c   :  { %219 = vst.msk [vmem:[%s1677_s2 + $0x410] sm:$0xff] %vm88_vm2, %v393_v6  ;;  %220 = vst.msk [vmem:[%s1677_s2 + $0x418] sm:$0xff] %vm88_vm2, %v393_v6 }
 0x11d   :  { %221 = vst.msk [vmem:[%s1677_s2 + $0x420] sm:$0xff] %vm88_vm2, %v393_v6  ;;  %222 = vst.msk [vmem:[%s1677_s2 + $0x428] sm:$0xff] %vm88_vm2, %v393_v6 }
 0x11e   :  { %223 = vst.msk [vmem:[%s1677_s2 + $0x430] sm:$0xff] %vm88_vm2, %v393_v6  ;;  %224 = vst.msk [vmem:[%s1677_s2 + $0x438] sm:$0xff] %vm88_vm2, %v393_v6 }
 0x11f   :  { %225 = vst.msk [vmem:[%s1677_s2 + $0x440] sm:$0xff] %vm88_vm2, %v393_v6  ;;  %226 = vst.msk [vmem:[%s1677_s2 + $0x448] sm:$0xff] %vm88_vm2, %v393_v6 }
 0x120   :  { %227 = vst.msk [vmem:[%s1677_s2 + $0x450] sm:$0xff] %vm88_vm2, %v393_v6  ;;  %228 = vst.msk [vmem:[%s1677_s2 + $0x458] sm:$0xff] %vm88_vm2, %v393_v6 }
 0x121   :  { %229 = vst.msk [vmem:[%s1677_s2 + $0x460] sm:$0xff] %vm88_vm2, %v393_v6  ;;  %230 = vst.msk [vmem:[%s1677_s2 + $0x468] sm:$0xff] %vm88_vm2, %v393_v6 }
 0x122   :  { %231 = vst.msk [vmem:[%s1677_s2 + $0x470] sm:$0xff] %vm88_vm2, %v393_v6  ;;  %232 = vst.msk [vmem:[%s1677_s2 + $0x478] sm:$0xff] %vm88_vm2, %v393_v6 }
 0x123   :  { %233 = vst.msk [vmem:[%s1677_s2 + $0x480] sm:$0xff] %vm88_vm2, %v393_v6  ;;  %234 = vst.msk [vmem:[%s1677_s2 + $0x488] sm:$0xff] %vm88_vm2, %v393_v6 }
 0x124   :  { %235 = vst.msk [vmem:[%s1677_s2 + $0x490] sm:$0xff] %vm88_vm2, %v393_v6  ;;  %236 = vst.msk [vmem:[%s1677_s2 + $0x498] sm:$0xff] %vm88_vm2, %v393_v6 }
 0x125   :  { %237 = vst.msk [vmem:[%s1677_s2 + $0x4a0] sm:$0xff] %vm88_vm2, %v393_v6  ;;  %238 = vst.msk [vmem:[%s1677_s2 + $0x4a8] sm:$0xff] %vm88_vm2, %v393_v6 }
 0x126   :  { %239 = vst.msk [vmem:[%s1677_s2 + $0x4b0] sm:$0xff] %vm88_vm2, %v393_v6  ;;  %240 = vst.msk [vmem:[%s1677_s2 + $0x4b8] sm:$0xff] %vm88_vm2, %v393_v6 }
 0x127   :  { %241 = vst.msk [vmem:[%s1677_s2 + $0x4c0] sm:$0xff] %vm88_vm2, %v393_v6  ;;  %242 = vst.msk [vmem:[%s1677_s2 + $0x4c8] sm:$0xff] %vm88_vm2, %v393_v6 }
 0x128   :  { %243 = vst.msk [vmem:[%s1677_s2 + $0x4d0] sm:$0xff] %vm88_vm2, %v393_v6  ;;  %244 = vst.msk [vmem:[%s1677_s2 + $0x4d8] sm:$0xff] %vm88_vm2, %v393_v6 }
 0x129   :  { %245 = vst.msk [vmem:[%s1677_s2 + $0x4e0] sm:$0xff] %vm88_vm2, %v393_v6  ;;  %246 = vst.msk [vmem:[%s1677_s2 + $0x4e8] sm:$0xff] %vm88_vm2, %v393_v6 }
 0x12a   :  { %247 = vst.msk [vmem:[%s1677_s2 + $0x4f0] sm:$0xff] %vm88_vm2, %v393_v6  ;;  %248 = vst.msk [vmem:[%s1677_s2 + $0x4f8] sm:$0xff] %vm88_vm2, %v393_v6 }
 0x12b   :  { %249 = vst.msk [vmem:[%s1677_s2 + $0x500] sm:$0xff] %vm88_vm2, %v393_v6  ;;  %250 = vst.msk [vmem:[%s1677_s2 + $0x508] sm:$0xff] %vm88_vm2, %v393_v6 }
 0x12c   :  { %251 = vst.msk [vmem:[%s1677_s2 + $0x510] sm:$0xff] %vm88_vm2, %v393_v6  ;;  %252 = vst.msk [vmem:[%s1677_s2 + $0x518] sm:$0xff] %vm88_vm2, %v393_v6 }
 0x12d   :  { %253 = vst.msk [vmem:[%s1677_s2 + $0x520] sm:$0xff] %vm88_vm2, %v393_v6  ;;  %254 = vst.msk [vmem:[%s1677_s2 + $0x528] sm:$0xff] %vm88_vm2, %v393_v6 }
 0x12e   :  { %255 = vst.msk [vmem:[%s1677_s2 + $0x530] sm:$0xff] %vm88_vm2, %v393_v6  ;;  %256 = vst.msk [vmem:[%s1677_s2 + $0x538] sm:$0xff] %vm88_vm2, %v393_v6 }
 0x12f   :  { %257 = vst.msk [vmem:[%s1677_s2 + $0x540] sm:$0xff] %vm88_vm2, %v393_v6  ;;  %258 = vst.msk [vmem:[%s1677_s2 + $0x548] sm:$0xff] %vm88_vm2, %v393_v6 }
 0x130   :  { %259 = vst.msk [vmem:[%s1677_s2 + $0x550] sm:$0xff] %vm88_vm2, %v393_v6  ;;  %260 = vst.msk [vmem:[%s1677_s2 + $0x558] sm:$0xff] %vm88_vm2, %v393_v6 }
 0x131   :  { %261 = vst.msk [vmem:[%s1677_s2 + $0x560] sm:$0xff] %vm88_vm2, %v393_v6  ;;  %262 = vst.msk [vmem:[%s1677_s2 + $0x568] sm:$0xff] %vm88_vm2, %v393_v6 }
 0x132   :  { %263 = vst.msk [vmem:[%s1677_s2 + $0x570] sm:$0xff] %vm88_vm2, %v393_v6  ;;  %264 = vst.msk [vmem:[%s1677_s2 + $0x578] sm:$0xff] %vm88_vm2, %v393_v6 }
 0x133   :  { %265 = vst.msk [vmem:[%s1677_s2 + $0x580] sm:$0xff] %vm88_vm2, %v393_v6  ;;  %266 = vst.msk [vmem:[%s1677_s2 + $0x588] sm:$0xff] %vm88_vm2, %v393_v6 }
 0x134   :  { %267 = vst.msk [vmem:[%s1677_s2 + $0x590] sm:$0xff] %vm88_vm2, %v393_v6  ;;  %268 = vst.msk [vmem:[%s1677_s2 + $0x598] sm:$0xff] %vm88_vm2, %v393_v6 }
 0x135   :  { %269 = vst.msk [vmem:[%s1677_s2 + $0x5a0] sm:$0xff] %vm88_vm2, %v393_v6  ;;  %270 = vst.msk [vmem:[%s1677_s2 + $0x5a8] sm:$0xff] %vm88_vm2, %v393_v6 }
 0x136   :  { %271 = vst.msk [vmem:[%s1677_s2 + $0x5b0] sm:$0xff] %vm88_vm2, %v393_v6  ;;  %272 = vst.msk [vmem:[%s1677_s2 + $0x5b8] sm:$0xff] %vm88_vm2, %v393_v6 }
 0x137   :  { %273 = vst.msk [vmem:[%s1677_s2 + $0x5c0] sm:$0xff] %vm88_vm2, %v393_v6  ;;  %274 = vst.msk [vmem:[%s1677_s2 + $0x5c8] sm:$0xff] %vm88_vm2, %v393_v6 }
 0x138   :  { %275 = vst.msk [vmem:[%s1677_s2 + $0x5d0] sm:$0xff] %vm88_vm2, %v393_v6  ;;  %276 = vst.msk [vmem:[%s1677_s2 + $0x5d8] sm:$0xff] %vm88_vm2, %v393_v6 }
 0x139   :  { %277 = vst.msk [vmem:[%s1677_s2 + $0x5e0] sm:$0xff] %vm88_vm2, %v393_v6  ;;  %278 = vst.msk [vmem:[%s1677_s2 + $0x5e8] sm:$0xff] %vm88_vm2, %v393_v6 }
 0x13a   :  { %279 = vst.msk [vmem:[%s1677_s2 + $0x5f0] sm:$0xff] %vm88_vm2, %v393_v6  ;;  %280 = vst.msk [vmem:[%s1677_s2 + $0x5f8] sm:$0xff] %vm88_vm2, %v393_v6 }
 0x13b   :  { %281 = vst.msk [vmem:[%s1677_s2 + $0x600] sm:$0xff] %vm88_vm2, %v393_v6  ;;  %282 = vst.msk [vmem:[%s1677_s2 + $0x608] sm:$0xff] %vm88_vm2, %v393_v6 }
 0x13c   :  { %283 = vst.msk [vmem:[%s1677_s2 + $0x610] sm:$0xff] %vm88_vm2, %v393_v6  ;;  %284 = vst.msk [vmem:[%s1677_s2 + $0x618] sm:$0xff] %vm88_vm2, %v393_v6 }
 0x13d   :  { %285 = vst.msk [vmem:[%s1677_s2 + $0x620] sm:$0xff] %vm88_vm2, %v393_v6  ;;  %286 = vst.msk [vmem:[%s1677_s2 + $0x628] sm:$0xff] %vm88_vm2, %v393_v6 }
 0x13e   :  { %287 = vst.msk [vmem:[%s1677_s2 + $0x630] sm:$0xff] %vm88_vm2, %v393_v6  ;;  %288 = vst.msk [vmem:[%s1677_s2 + $0x638] sm:$0xff] %vm88_vm2, %v393_v6 }
 0x13f   :  { %289 = vst.msk [vmem:[%s1677_s2 + $0x640] sm:$0xff] %vm88_vm2, %v393_v6  ;;  %290 = vst.msk [vmem:[%s1677_s2 + $0x648] sm:$0xff] %vm88_vm2, %v393_v6 }
 0x140   :  { %291 = vst.msk [vmem:[%s1677_s2 + $0x650] sm:$0xff] %vm88_vm2, %v393_v6  ;;  %292 = vst.msk [vmem:[%s1677_s2 + $0x658] sm:$0xff] %vm88_vm2, %v393_v6 }
 0x141   :  { %293 = vst.msk [vmem:[%s1677_s2 + $0x660] sm:$0xff] %vm88_vm2, %v393_v6  ;;  %294 = vst.msk [vmem:[%s1677_s2 + $0x668] sm:$0xff] %vm88_vm2, %v393_v6 }
 0x142   :  { %295 = vst.msk [vmem:[%s1677_s2 + $0x670] sm:$0xff] %vm88_vm2, %v393_v6  ;;  %296 = vst.msk [vmem:[%s1677_s2 + $0x678] sm:$0xff] %vm88_vm2, %v393_v6 }
 0x143   :  { %297 = vst.msk [vmem:[%s1677_s2 + $0x680] sm:$0xff] %vm88_vm2, %v393_v6  ;;  %298 = vst.msk [vmem:[%s1677_s2 + $0x688] sm:$0xff] %vm88_vm2, %v393_v6 }
 0x144   :  { %299 = vst.msk [vmem:[%s1677_s2 + $0x690] sm:$0xff] %vm88_vm2, %v393_v6  ;;  %300 = vst.msk [vmem:[%s1677_s2 + $0x698] sm:$0xff] %vm88_vm2, %v393_v6 }
 0x145   :  { %301 = vst.msk [vmem:[%s1677_s2 + $0x6a0] sm:$0xff] %vm88_vm2, %v393_v6  ;;  %302 = vst.msk [vmem:[%s1677_s2 + $0x6a8] sm:$0xff] %vm88_vm2, %v393_v6 }
 0x146   :  { %303 = vst.msk [vmem:[%s1677_s2 + $0x6b0] sm:$0xff] %vm88_vm2, %v393_v6  ;;  %304 = vst.msk [vmem:[%s1677_s2 + $0x6b8] sm:$0xff] %vm88_vm2, %v393_v6 }
 0x147   :  { %305 = vst.msk [vmem:[%s1677_s2 + $0x6c0] sm:$0xff] %vm88_vm2, %v393_v6  ;;  %306 = vst.msk [vmem:[%s1677_s2 + $0x6c8] sm:$0xff] %vm88_vm2, %v393_v6 }
 0x148   :  { %307 = vst.msk [vmem:[%s1677_s2 + $0x6d0] sm:$0xff] %vm88_vm2, %v393_v6  ;;  %308 = vst.msk [vmem:[%s1677_s2 + $0x6d8] sm:$0xff] %vm88_vm2, %v393_v6 }
 0x149   :  { %309 = vst.msk [vmem:[%s1677_s2 + $0x6e0] sm:$0xff] %vm88_vm2, %v393_v6  ;;  %310 = vst.msk [vmem:[%s1677_s2 + $0x6e8] sm:$0xff] %vm88_vm2, %v393_v6 }
 0x14a   :  { %311 = vst.msk [vmem:[%s1677_s2 + $0x6f0] sm:$0xff] %vm88_vm2, %v393_v6  ;;  %312 = vst.msk [vmem:[%s1677_s2 + $0x6f8] sm:$0xff] %vm88_vm2, %v393_v6 }
 0x14b   :  { %313 = vst.msk [vmem:[%s1677_s2 + $0x700] sm:$0xff] %vm88_vm2, %v393_v6  ;;  %314 = vst.msk [vmem:[%s1677_s2 + $0x708] sm:$0xff] %vm88_vm2, %v393_v6 }
 0x14c   :  { %315 = vst.msk [vmem:[%s1677_s2 + $0x710] sm:$0xff] %vm88_vm2, %v393_v6  ;;  %316 = vst.msk [vmem:[%s1677_s2 + $0x718] sm:$0xff] %vm88_vm2, %v393_v6 }
 0x14d   :  { %317 = vst.msk [vmem:[%s1677_s2 + $0x720] sm:$0xff] %vm88_vm2, %v393_v6  ;;  %318 = vst.msk [vmem:[%s1677_s2 + $0x728] sm:$0xff] %vm88_vm2, %v393_v6 }
 0x14e   :  { %319 = vst.msk [vmem:[%s1677_s2 + $0x730] sm:$0xff] %vm88_vm2, %v393_v6  ;;  %320 = vst.msk [vmem:[%s1677_s2 + $0x738] sm:$0xff] %vm88_vm2, %v393_v6 }
 0x14f   :  { %321 = vst.msk [vmem:[%s1677_s2 + $0x740] sm:$0xff] %vm88_vm2, %v393_v6  ;;  %322 = vst.msk [vmem:[%s1677_s2 + $0x748] sm:$0xff] %vm88_vm2, %v393_v6 }
 0x150   :  { %323 = vst.msk [vmem:[%s1677_s2 + $0x750] sm:$0xff] %vm88_vm2, %v393_v6  ;;  %324 = vst.msk [vmem:[%s1677_s2 + $0x758] sm:$0xff] %vm88_vm2, %v393_v6 }
 0x151   :  { %325 = vst.msk [vmem:[%s1677_s2 + $0x760] sm:$0xff] %vm88_vm2, %v393_v6  ;;  %326 = vst.msk [vmem:[%s1677_s2 + $0x768] sm:$0xff] %vm88_vm2, %v393_v6 }
 0x152   :  { %327 = vst.msk [vmem:[%s1677_s2 + $0x770] sm:$0xff] %vm88_vm2, %v393_v6  ;;  %328 = vst.msk [vmem:[%s1677_s2 + $0x778] sm:$0xff] %vm88_vm2, %v393_v6 }
 0x153   :  { %329 = vst.msk [vmem:[%s1677_s2 + $0x780] sm:$0xff] %vm88_vm2, %v393_v6  ;;  %330 = vst.msk [vmem:[%s1677_s2 + $0x788] sm:$0xff] %vm88_vm2, %v393_v6 }
 0x154   :  { %331 = vst.msk [vmem:[%s1677_s2 + $0x790] sm:$0xff] %vm88_vm2, %v393_v6  ;;  %332 = vst.msk [vmem:[%s1677_s2 + $0x798] sm:$0xff] %vm88_vm2, %v393_v6 }
 0x155   :  { %333 = vst.msk [vmem:[%s1677_s2 + $0x7a0] sm:$0xff] %vm88_vm2, %v393_v6  ;;  %334 = vst.msk [vmem:[%s1677_s2 + $0x7a8] sm:$0xff] %vm88_vm2, %v393_v6 }
 0x156   :  { %335 = vst.msk [vmem:[%s1677_s2 + $0x7b0] sm:$0xff] %vm88_vm2, %v393_v6  ;;  %336 = vst.msk [vmem:[%s1677_s2 + $0x7b8] sm:$0xff] %vm88_vm2, %v393_v6 }
 0x157   :  { %337 = vst.msk [vmem:[%s1677_s2 + $0x7c0] sm:$0xff] %vm88_vm2, %v393_v6  ;;  %338 = vst.msk [vmem:[%s1677_s2 + $0x7c8] sm:$0xff] %vm88_vm2, %v393_v6 }
 0x158   :  { %339 = vst.msk [vmem:[%s1677_s2 + $0x7d0] sm:$0xff] %vm88_vm2, %v393_v6  ;;  %340 = vst.msk [vmem:[%s1677_s2 + $0x7d8] sm:$0xff] %vm88_vm2, %v393_v6 }
 0x159   :  { %341 = vst.msk [vmem:[%s1677_s2 + $0x7e0] sm:$0xff] %vm88_vm2, %v393_v6  ;;  %342 = vst.msk [vmem:[%s1677_s2 + $0x7e8] sm:$0xff] %vm88_vm2, %v393_v6 }
 0x15a   :  { %343 = vst.msk [vmem:[%s1677_s2 + $0x7f0] sm:$0xff] %vm88_vm2, %v393_v6  ;;  %344 = vst.msk [vmem:[%s1677_s2 + $0x7f8] sm:$0xff] %vm88_vm2, %v393_v6 }

</bundles_post_ra>
